<compile_context>
chip_gen: v7x
topology: tpu7x:2x2x1
jax: 0.10.0
libtpu: 0.0.40
codegen_flags: <defaults>
</compile_context>

<pallas_src>
import math

import jax
import jax.numpy as jnp
from jax.experimental import pallas as pl
from jax.experimental.pallas import tpu as pltpu


def _fused_reorder_kernel(adj_ref, x_ref, w_ref, b_ref, o_ref):
    """relu((adj_tile @ x) @ W + b) -- used when F_in <= F_out."""
    h = jnp.dot(adj_ref[...], x_ref[...], preferred_element_type=jnp.float32)
    out = jnp.dot(h, w_ref[...], preferred_element_type=jnp.float32)
    out = out + b_ref[...]
    o_ref[...] = jnp.maximum(out, 0.0).astype(o_ref.dtype)


def _fused_support_kernel(adj_ref, x_ref, w_ref, b_ref, o_ref, support_ref):
    """relu(adj_tile @ (x @ W) + b) -- used when F_in > F_out.

    `support = x @ W` is computed once into a persistent VMEM scratch on grid
    step 0; the grid axis is "arbitrary" (sequential on one core) so this init
    is well-defined.
    """
    @pl.when(pl.program_id(0) == 0)
    def _():
        support_ref[...] = jnp.dot(
            x_ref[...], w_ref[...], preferred_element_type=jnp.float32
        )

    out = jnp.dot(
        adj_ref[...], support_ref[...], preferred_element_type=jnp.float32
    )
    out = out + b_ref[...]
    o_ref[...] = jnp.maximum(out, 0.0).astype(o_ref.dtype)


def _choose_row_tile(n_rows: int) -> int:
    """Largest multiple-of-8 row tile (<=512) dividing n_rows, preferring >=2
    row blocks so the parallel grid axis can shard across v7x's 2 TensorCores."""
    for tm in (512, 256, 128, 64, 32, 16, 8):
        if n_rows % tm == 0 and n_rows // tm >= 2:
            return tm
    for tm in (512, 256, 128, 64, 32, 16, 8):
        if n_rows % tm == 0:
            return tm
    return n_rows  # irregular row count: single full-height block


def gcn_en_forward(x, adj, weight, bias):
    """Pallas implementation of GCN_En.forward(x, adj) in inference mode:
       relu(adj @ (x @ weight) + bias)   (dropout is identity at eval)."""
    n, f_in = x.shape
    f_in2, f_out = weight.shape
    assert f_in == f_in2, (x.shape, weight.shape)
    assert adj.shape == (n, n), adj.shape
    assert bias.shape == (f_out,), bias.shape

    tm = _choose_row_tile(n)
    grid = (n // tm,)
    reorder = f_in <= f_out

    bias2d = bias.reshape(1, f_out)

    # VMEM budget (f32): streamed adj/out tiles are double-buffered; x, W, bias
    # (and the support scratch in the non-reordered path) are fully resident.
    # This fused design targets small/medium graphs where these fit in VMEM.
    bytes_f32 = 4
    vmem_needed = bytes_f32 * (
        2 * tm * n              # adj row tile (double-buffered)
        + n * f_in              # x (resident)
        + f_in * f_out          # W (resident)
        + f_out                 # bias (resident)
        + 2 * tm * f_out        # output tile (double-buffered)
        + (0 if reorder else n * f_out)  # support scratch
    )
    vmem_limit = int(min(64 * 1024 * 1024, max(32 * 1024 * 1024, 2 * vmem_needed)))

    adj_spec = pl.BlockSpec((tm, n), lambda i: (i, 0))          # streamed rows
    x_spec = pl.BlockSpec((n, f_in), lambda i: (0, 0))          # resident
    w_spec = pl.BlockSpec((f_in, f_out), lambda i: (0, 0))      # resident
    b_spec = pl.BlockSpec((1, f_out), lambda i: (0, 0))         # resident
    out_spec = pl.BlockSpec((tm, f_out), lambda i: (i, 0))      # lane-dense

    if reorder:
        kernel = _fused_reorder_kernel
        scratch_shapes = []
        semantics = ("parallel",)   # independent row tiles -> megacore shard
    else:
        kernel = _fused_support_kernel
        scratch_shapes = [pltpu.VMEM((n, f_out), jnp.float32)]
        semantics = ("arbitrary",)  # scratch init on step 0 must stay sequential

    return pl.pallas_call(
        kernel,
        out_shape=jax.ShapeDtypeStruct((n, f_out), x.dtype),
        grid_spec=pltpu.PrefetchScalarGridSpec(
            num_scalar_prefetch=0,
            grid=grid,
            in_specs=[adj_spec, x_spec, w_spec, b_spec],
            out_specs=out_spec,
            scratch_shapes=scratch_shapes,
        ),
        compiler_params=pltpu.CompilerParams(
            dimension_semantics=semantics,
            vmem_limit_bytes=vmem_limit,
        ),
    )(adj, x, weight, bias2d)


def init_params(key, in_features, out_features, dtype=jnp.float32):
    """Deterministic re-implementation of GraphConvolution.reset_parameters()."""
    stdv = 1.0 / math.sqrt(out_features)
    kw, kb = jax.random.split(key)
    weight = jax.random.uniform(
        kw, (in_features, out_features), dtype=dtype, minval=-stdv, maxval=stdv
    )
    bias = jax.random.uniform(
        kb, (out_features,), dtype=dtype, minval=-stdv, maxval=stdv
    )
    return weight, bias


def _run_case(num_nodes, nfeat, nhid, subkey):
    k_x, k_adj, k_param = jax.random.split(subkey, 3)
    x = jax.random.normal(k_x, (num_nodes, nfeat), dtype=jnp.float32)
    # Dense row-normalized adjacency; torch.spmm(adj, support) == adj @ support.
    adj = jax.random.uniform(k_adj, (num_nodes, num_nodes), dtype=jnp.float32)
    adj = adj / jnp.sum(adj, axis=1, keepdims=True)
    weight, bias = init_params(k_param, nfeat, nhid)

    out = gcn_en_forward(x, adj, weight, bias)
    out = jax.block_until_ready(out)

    # Pure-JAX reference (inference forward of GCN_En).
    ref = jnp.maximum(adj @ (x @ weight) + bias, 0.0)
    assert out.shape == (num_nodes, nhid)
    # Tolerance accounts for MXU matmul passes + the statically reordered
    # (mathematically identical) association (adj @ x) @ W vs adj @ (x @ W).
    err = float(jnp.max(jnp.abs(out - ref)))
    assert jnp.allclose(out, ref, atol=5e-3, rtol=5e-3), err
    return out


if __name__ == "__main__":
    key = jax.random.PRNGKey(0)
    k1, k2 = jax.random.split(key)

    # Case 1: nfeat < nhid -> fused (adj @ x) @ W path, "parallel" grid of 2
    # row blocks (both v7x TensorCores get work).
    _run_case(num_nodes=256, nfeat=64, nhid=128, subkey=k1)

    # Case 2: nfeat > nhid -> fused adj @ (x @ W) path with support computed
    # once into a VMEM scratch.
    _run_case(num_nodes=128, nfeat=256, nhid=128, subkey=k2)

    print("KERNEL_OK")
</pallas_src>

<mosaic_0001>
module attributes {stable_mosaic.version = 11 : i64} {
  func.func @_fused_reorder_kernel(%arg0: i32, %arg1: memref<128x256xf32, #tpu.memory_space<vmem>>, %arg2: memref<256x64xf32, #tpu.memory_space<vmem>>, %arg3: memref<64x128xf32, #tpu.memory_space<vmem>>, %arg4: memref<1x128xf32, #tpu.memory_space<vmem>>, %arg5: memref<128x128xf32, #tpu.memory_space<vmem>>) attributes {dimension_semantics = [#tpu.dimension_semantics<parallel>], iteration_bounds = array<i64: 2>, scalar_prefetch = 0 : i64, scratch_operands = 0 : i64, tpu.core_type = #tpu.core_type<tc>, window_params = [{transform_indices = @transform_0, window_bounds = array<i64: 128, 256>}, {pipeline_mode = #tpu.pipeline_mode<synchronous>, transform_indices = @transform_1, window_bounds = array<i64: 256, 64>}, {pipeline_mode = #tpu.pipeline_mode<synchronous>, transform_indices = @transform_2, window_bounds = array<i64: 64, 128>}, {pipeline_mode = #tpu.pipeline_mode<synchronous>, transform_indices = @transform_3, window_bounds = array<i64: 1, 128>}, {transform_indices = @transform_4, window_bounds = array<i64: 128, 128>}]} {
    %c0 = arith.constant 0 : index
    %c0_0 = arith.constant 0 : index
    %0 = vector.load %arg1[%c0, %c0_0] : memref<128x256xf32, #tpu.memory_space<vmem>>, vector<128x256xf32>
    %c0_1 = arith.constant 0 : index
    %c0_2 = arith.constant 0 : index
    %1 = vector.load %arg2[%c0_1, %c0_2] : memref<256x64xf32, #tpu.memory_space<vmem>>, vector<256x64xf32>
    %cst = arith.constant dense<0.000000e+00> : vector<128x64xf32>
    %2 = tpu.matmul %0, %1, %cst {dimension_numbers = #tpu.dot_dimension_numbers<[1], [0], [0], [1], [0, 0, 1, 1], [], []>} : vector<128x256xf32>, vector<256x64xf32>, vector<128x64xf32> -> vector<128x64xf32>
    %c0_3 = arith.constant 0 : index
    %c0_4 = arith.constant 0 : index
    %3 = vector.load %arg3[%c0_3, %c0_4] : memref<64x128xf32, #tpu.memory_space<vmem>>, vector<64x128xf32>
    %cst_5 = arith.constant dense<0.000000e+00> : vector<128x128xf32>
    %4 = tpu.matmul %2, %3, %cst_5 {dimension_numbers = #tpu.dot_dimension_numbers<[1], [0], [0], [1], [0, 0, 1, 1], [], []>} : vector<128x64xf32>, vector<64x128xf32>, vector<128x128xf32> -> vector<128x128xf32>
    %c0_6 = arith.constant 0 : index
    %c0_7 = arith.constant 0 : index
    %5 = vector.load %arg4[%c0_6, %c0_7] : memref<1x128xf32, #tpu.memory_space<vmem>>, vector<1x128xf32>
    %6 = vector.broadcast %5 : vector<1x128xf32> to vector<128x128xf32>
    %7 = arith.addf %4, %6 : vector<128x128xf32>
    %cst_8 = arith.constant 0.000000e+00 : f32
    %8 = vector.broadcast %cst_8 : f32 to vector<128x128xf32>
    %9 = arith.maximumf %7, %8 : vector<128x128xf32>
    %c0_9 = arith.constant 0 : index
    %c0_10 = arith.constant 0 : index
    %10 = vector.load %arg5[%c0_9, %c0_10] : memref<128x128xf32, #tpu.memory_space<vmem>>, vector<128x128xf32>
    tpu.vector_store %arg5[%c0_9, %c0_10], %9 {strides = array<i32>} : memref<128x128xf32, #tpu.memory_space<vmem>>, vector<128x128xf32>,
    return
  }
  func.func @transform_0(%arg0: i32) -> (i32, i32) {
    %c0_i32 = arith.constant 0 : i32
    %c0_i32_0 = arith.constant 0 : i32
    return %arg0, %c0_i32 : i32, i32
  }
  func.func @transform_1(%arg0: i32) -> (i32, i32) {
    %c0_i32 = arith.constant 0 : i32
    %c0_i32_0 = arith.constant 0 : i32
    %c0_i32_1 = arith.constant 0 : i32
    return %c0_i32, %c0_i32_0 : i32, i32
  }
  func.func @transform_2(%arg0: i32) -> (i32, i32) {
    %c0_i32 = arith.constant 0 : i32
    %c0_i32_0 = arith.constant 0 : i32
    %c0_i32_1 = arith.constant 0 : i32
    return %c0_i32, %c0_i32_0 : i32, i32
  }
  func.func @transform_3(%arg0: i32) -> (i32, i32) {
    %c0_i32 = arith.constant 0 : i32
    %c0_i32_0 = arith.constant 0 : i32
    %c0_i32_1 = arith.constant 0 : i32
    return %c0_i32, %c0_i32_0 : i32, i32
  }
  func.func @transform_4(%arg0: i32) -> (i32, i32) {
    %c0_i32 = arith.constant 0 : i32
    %c0_i32_0 = arith.constant 0 : i32
    return %arg0, %c0_i32 : i32, i32
  }
}

</mosaic_0001>

<bundles_post_ra>
// kernel: tpu_custom_call.1
= control target key start
LH: loop header
LB: loop body
LE: loop exit
PB: predicated region body
PF: predicated region fallthrough
CT: control target
= control target key end

     0   :  { %9 = vsyncpa [#allocation3], 0  ;;  %s1551_s0 = inlined_call_operand.hbm [shape: f32[256,256], index: 0, kind: input, shape index: {}]   ;;  %s1552_s1 = inlined_call_operand.vmem [shape: f32[256,64], index: 1, kind: input, shape index: {}]   ;;  %s1553_s2 = inlined_call_operand.vmem [shape: f32[64,128], index: 2, kind: input, shape index: {}]   ;;  %s1554_s3 = inlined_call_operand.vmem [shape: f32[1,128], index: 3, kind: input, shape index: {}]   ;;  %s1555_s4 = inlined_call_operand.hbm [shape: f32[256,128], index: 4, kind: output, shape index: {}]  }
   0x1   :  { %11 = vsyncpa [#allocation3 + $0x1], 0 }
   0x2   :  { %12 = vsyncpa [#allocation4], 0 }
   0x3   :  { %14 = vsyncpa [#allocation4 + $0x1], 0  ;;  %s1178_s15 = smov 0   ;;  %s1180_s16 = smov 0  }
   0x4   :  { %s1182_s17 = smov 0   ;;  %s1184_s18 = smov 0  }
   0x5 LB: > { %s1199_s19 = sadd.s32 4294967295, %s1145_s18   ;;  %s756_s20 = sadd.s32 4294967294, %s1145_s18   ;;  %s1145_s18 = sphi %s1184_s18, %s1568_s18   ;;  %s1141_s17 = sphi %s1182_s17, %s1567_s17   ;;  %s1137_s16 = sphi %s1180_s16, %s1566_s16   ;;  %s1133_s15 = sphi %s1178_s15, %s1565_s15  }
   0x6   : > { %s1203_s21 = sadd.s32 1, %s1145_s18   ;;  %s27_s22 = sadd.s32 1, %s1141_s17 }
   0x7   : > { %s24_s23 = ssub.s32 %s1145_s18, %s1203_s21  ;;  %p34_p0 = scmp.ne.s32.totalorder %s1141_s17, %s1137_s16 }
   0x8   : > { %p25_p1 = scmp.eq.s32.totalorder %s24_s23, 0  ;;  %p35_p2 = scmp.eq.s32.totalorder %s1145_s18, 0 }
   0x9   : > { %p40_p3 = scmp.ne.s32.totalorder %s1137_s16, %s1133_s15  ;;  %p41_p4 = scmp.eq.s32.totalorder %s1199_s19, 0 }
   0xa   : > { %s1215_s24 = scalar_select %p25_p1, %s1141_s17, %s27_s22  }
   0xb   : > { %p1217_p5 = por %p35_p2, %p34_p0  ;;  %p1221_p6 = por %p41_p4, %p40_p3 }
   0xc   : > { %p127_p7 = scmp.eq.s32.totalorder %s1199_s19, 1  ;;  %p133_p8 = scmp.eq.s32.totalorder %s756_s20, 1 }
   0xd   : > { %p1011_p10 = scmp.lt.s32.totalorder %s1145_s18, 2  ;;  %s162_s29 = sand.u32 1, %s1141_s17  }
   0xe   : > { %p1228_p11 = por %p127_p7, %p34_p0  ;;  %p1232_p12 = por %p133_p8, %p40_p3 }
   0xf   : > { %s789_s30 = sshll.u32 %s1145_s18, 12  ;;  %s759_s5 = sshll.u32 %s162_s29, 8 }
  0x10   : > { %s1559_s27 = scalar_select %p1228_p11, 1, 0 }
  0x11   : > { %s1560_s28 = scalar_select %p1232_p12, 1, 0 }
  0x12   : > { %s1241_s8 = scalar_lea.hbm %s1551_s0, %s789_s30  ;;  %s166_s9 = scalar_lea.vmem [#allocation2], %s759_s5 }
  0x13   : > { %s174_s10 = sshll.u32 %s166_s9, 4  ;;  %p1245_p13 = pnand %p1011_p10, %p1217_p5  ;;  %s1249_s10 = int_to_ptr.vmem [resolvable:$true] %s174_s10 }
  0x14   : > { %s1251_s12 = scalar_lea.sflag [#allocation3], %s162_s29  ;;  %s1049_s13 = scalar_lea.hbm %s1241_s8, 4096 }
  0x15   : > { %p1050_p0 = scmp.ne.s32.totalorder %s1241_s8, %s1049_s13  ;;  %p1051_p1 = pneg %p1245_p13 }
  0x16   : > { %s1054_s22 = scalar_lea.hbm %s1551_s0, 8192  ;;  %p1055_p4 = scmp.lt.u32.totalorder %s1241_s8, %s1551_s0 }
  0x17   : > { %p1052_p2 = pnand %p1051_p1, %p1050_p0  ;;  %p1056_p5 = scmp.lt.u32.totalorder %s1054_s22, %s1049_s13 }
  0x18   : > { %p1058_p8 = scmp.lt.u32.totalorder %s1049_s13, %s1241_s8 }
  0x19   : > { %p1053_p3 = pneg %p1052_p2  ;;  %p1057_p7 = por %p1056_p5, %p1055_p4 }
  0x1b   : > { %p1059_p10 = por %p1058_p8, %p1057_p7 }
  0x1d   : > { %p1060_p9 = pnand %p1059_p10, %p1053_p3 }
  0x1f   : > { %1063 = shalt.err (!%p1060_p9)
}
  0x20   : > { %s1064_s29 = scalar_lea.vmem %s1249_s10, 4096  ;;  %s1147_s30 = smov [#allocation2]  }
  0x21   : > { %p1065_p0 = scmp.ne.s32.totalorder %s1249_s10, %s1064_s29  ;;  %s1069_s5 = sshll.u32 %s1147_s30, 4  ;;  %s1070_s5 = int_to_ptr.vmem [resolvable:$false] %s1069_s5 }
  0x22   : > { %s1071_s6 = scalar_lea.vmem %s1070_s5, 8192  ;;  %p1072_p11 = scmp.lt.s32.totalorder %s1249_s10, %s1070_s5 }
  0x23   : > { %p1067_p2 = pnand %p1065_p0, %p1051_p1  ;;  %p1073_p4 = scmp.lt.s32.totalorder %s1071_s6, %s1064_s29 }
  0x25   : > { %p1068_p12 = pneg %p1067_p2  ;;  %p1074_p5 = por %p1073_p4, %p1072_p11 }
  0x27   : > { %p1075_p7 = pnand %p1074_p5, %p1068_p12 }
  0x29   : > { %1078 = shalt.err (!%p1075_p7)
}
  0x2a   : > { %s1148_s7 = smov 256   ;;  %s1149_s9 = smov 16  }
  0x2b   : > { %1006 = dma.hbm_to_vmem [thread:$0]  (!%p1245_p13), %s1241_s8, 4096, %s1249_s10, %s1251_s12, %s1148_s7, %s1148_s7, %s1149_s9  }
  0x2c   : > { %p763_p9 = scmp.ge.s32.totalorder %s1145_s18, 1  ;;  %p182_p1 = scmp.lt.s32.totalorder %s1145_s18, 3 }
  0x2e   : > { %p183_p3 = pnand %p763_p9, %p182_p1 }
  0x2f   : > { %s1282_s13 = sand.u32 (!%p183_p3), 1, %s1137_s16  }
  0x30   : > { %186 = sbr.rel (%p183_p3) target bundleno = 590 (0x24e), region = 36  ;;  %s764_s14 = sshll.u32 (!%p183_p3), %s1282_s13, 8 }
  0x31   : > { %s189_s20 = scalar_lea.sflag (!%p183_p3), [#allocation3], %s1282_s13  ;;  %s1286_s22 = scalar_lea.vmem (!%p183_p3), [#allocation2], %s764_s14 }
  0x37   : > { %1124 = dma.done.wait (%p1221_p6), %s189_s20, 4096  }
  0x38   : > { %1126 = vsyncadd (%p1221_p6), %s189_s20, 4294963200  ;;  %v267_v0 = vld [vmem:[%s1552_s1 + $0x80] sm:$0xff]  ;;  %v268_v1 = vld [vmem:[%s1552_s1 + $0x88] sm:$0xff]  ;;  %vm443_vm0 = vcmask 523264   ;;  %s765_s29 = sshll.u32 %s1282_s13, 7  ;;  %s790_s5 = sshll.u32 %s1199_s19, 11 }
  0x39   : > { %v251_v2 = vld [vmem:[%s1552_s1] sm:$0xff]  ;;  %v935_v3 = vpack.c.bf16 %v268_v1, %v267_v0  ;;  %v252_v4 = vld [vmem:[%s1552_s1 + $0x8] sm:$0xff]  ;;  %v269_v5 = vld [vmem:[%s1552_s1 + $0x90] sm:$0xff]  ;;  %s1468_s30 = scalar_lea.vmem [#allocation5], %s765_s29  ;;  %s1503_s9 = scalar_lea.hbm %s1555_s4, %s790_s5 }
  0x3a   : > { %v270_v6 = vld [vmem:[%s1552_s1 + $0x98] sm:$0xff]  ;;  %v937_v7 = vpack.c.bf16 %v252_v4, %v251_v2  ;;  %v253_v9 = vld [vmem:[%s1552_s1 + $0x10] sm:$0xff]  ;;  %v271_v11 = vld [vmem:[%s1552_s1 + $0xa0] sm:$0xff]  ;;  %s683_s26 = sshll.u32 %s1468_s30, 4  ;;  %s670_s19 = scalar_lea.sflag [#allocation4], %s1282_s13  ;;  %s1505_s26 = int_to_ptr.vmem [resolvable:$true] %s683_s26 }
  0x3b   : > { %v939_v8 = vpack.c.bf16 %v270_v6, %v269_v5  ;;  %v254_v10 = vld [vmem:[%s1552_s1 + $0x18] sm:$0xff]  ;;  %936 = vmatprep.subr.bf16.mxu0 %v935_v3  ;;  %v272_v12 = vld [vmem:[%s1552_s1 + $0xa8] sm:$0xff]  ;;  %983 = vmatprep.subr.bf16.mxu1 %v935_v3  ;;  %v255_v15 = vld [vmem:[%s1552_s1 + $0x20] sm:$0xff]  ;;  %s1079_s14 = scalar_lea.vmem %s1505_s26, 2048  ;;  %p1562_p11 = scmp.ne.s32.totalorder %s1559_s27, 0 }
  0x3c   : > { %938 = vmatpush3.bf16.msra.mxu0 %v937_v7  ;;  %v941_v13 = vpack.c.bf16 %v254_v10, %v253_v9  ;;  %991 = vmatpush3.bf16.msra.mxu1 %v937_v7  ;;  %v943_v14 = vpack.c.bf16 %v272_v12, %v271_v11  ;;  %v256_v16 = vld [vmem:[%s1552_s1 + $0x28] sm:$0xff]  ;;  %v273_v17 = vld [vmem:[%s1552_s1 + $0xb0] sm:$0xff]  ;;  %v274_v18 = vld [vmem:[%s1552_s1 + $0xb8] sm:$0xff]  ;;  %p1080_p6 = scmp.ne.s32.totalorder %s1505_s26, %s1079_s14  ;;  %s1150_s20 = smov [#allocation5]  }
  0x3d   : > { %940 = vmatprep.subr.bf16.mxu0 %v939_v8  ;;  %984 = vmatprep.subr.bf16.mxu1 %v939_v8  ;;  %v945_v19 = vpack.c.bf16 %v256_v16, %v255_v15  ;;  %v947_v20 = vpack.c.bf16 %v274_v18, %v273_v17  ;;  %v257_v21 = vld [vmem:[%s1552_s1 + $0x30] sm:$0xff]  ;;  %v258_v22 = vld [vmem:[%s1552_s1 + $0x38] sm:$0xff]  ;;  %v275_v23 = vld [vmem:[%s1552_s1 + $0xc0] sm:$0xff]  ;;  %s1083_s8 = sshll.u32 %s1150_s20, 4  ;;  %s1084_s8 = int_to_ptr.vmem [resolvable:$false] %s1083_s8 }
  0x3e   : > { %v276_v24 = vld [vmem:[%s1552_s1 + $0xc8] sm:$0xff]  ;;  %v949_v26 = vpack.c.bf16 %v258_v22, %v257_v21  ;;  %v259_v28 = vld [vmem:[%s1552_s1 + $0x40] sm:$0xff]  ;;  %v277_v30 = vld [vmem:[%s1552_s1 + $0xd0] sm:$0xff]  ;;  %p1081_p12 = pnand %p1080_p6, %p1562_p11  ;;  %s1085_s10 = scalar_lea.vmem %s1084_s8, 4096 }
  0x3f   : > { %v220_v25 = vld [vmem:[%s1286_s22 + $0x8] sm:$0xff]  ;;  %v951_v27 = vpack.c.bf16 %v276_v24, %v275_v23  ;;  %v278_v31 = vld [vmem:[%s1552_s1 + $0xd8] sm:$0xff]  ;;  %v261_v34 = vld [vmem:[%s1552_s1 + $0x50] sm:$0xff]  ;;  %p1086_p8 = scmp.lt.s32.totalorder %s1505_s26, %s1084_s8  ;;  %p1087_p10 = scmp.lt.s32.totalorder %s1085_s10, %s1079_s14 }
  0x40   : > { %942 = vmatpush3.bf16.msra.mxu0 %v941_v13  ;;  %992 = vmatpush3.bf16.msra.mxu1 %v941_v13  ;;  %v260_v29 = vld [vmem:[%s1552_s1 + $0x48] sm:$0xff]  ;;  %v955_v33 = vpack.c.bf16 %v278_v31, %v277_v30  ;;  %v262_v35 = vld [vmem:[%s1552_s1 + $0x58] sm:$0xff]  ;;  %v279_v37 = vld [vmem:[%s1552_s1 + $0xe0] sm:$0xff]  ;;  %p1082_p13 = pneg %p1081_p12 }
  0x41   : > { %944 = vmatprep.subr.bf16.mxu0 %v943_v14  ;;  %985 = vmatprep.subr.bf16.mxu1 %v943_v14  ;;  %v953_v32 = vpack.c.bf16 %v260_v29, %v259_v28  ;;  %v244_v36 = vld [vmem:[%s1286_s22 + $0xc8] sm:$0xff]  ;;  %v957_v39 = vpack.c.bf16 %v262_v35, %v261_v34  ;;  %v263_v41 = vld [vmem:[%s1552_s1 + $0x60] sm:$0xff]  ;;  %v281_v43 = vld [vmem:[%s1552_s1 + $0xf0] sm:$0xff]  ;;  %p1088_p0 = por %p1087_p10, %p1086_p8 }
  0x42   : > { %347 = vmatprep.mubr.f32.mxu0 %v220_v25  ;;  %v280_v38 = vld [vmem:[%s1552_s1 + $0xe8] sm:$0xff]  ;;  %407 = vmatprep.mubr.f32.mxu1 %v244_v36  ;;  %v282_v44 = vld [vmem:[%s1552_s1 + $0xf8] sm:$0xff]  ;;  %v265_v47 = vld [vmem:[%s1552_s1 + $0x70] sm:$0xff] }
  0x43   : > { %v959_v40 = vpack.c.bf16 %v280_v38, %v279_v37  ;;  %v264_v42 = vld [vmem:[%s1552_s1 + $0x68] sm:$0xff]  ;;  %v963_v46 = vpack.c.bf16 %v282_v44, %v281_v43  ;;  %v266_v48 = vld [vmem:[%s1552_s1 + $0x78] sm:$0xff]  ;;  %v428_v49 = vld [vmem:[%s1553_s2] sm:$0xff]  ;;  %p1089_p2 = pnand %p1088_p0, %p1082_p13 }
  0x44   : > { %946 = vmatpush3.bf16.msra.mxu0 %v945_v19  ;;  %993 = vmatpush3.bf16.msra.mxu1 %v945_v19  ;;  %v961_v45 = vpack.c.bf16 %v264_v42, %v263_v41  ;;  %v429_v50 = vld [vmem:[%s1553_s2 + $0x8] sm:$0xff]  ;;  %v965_v51 = vpack.c.bf16 %v266_v48, %v265_v47  ;;  %v430_v53 = vld [vmem:[%s1553_s2 + $0x10] sm:$0xff]  ;;  %v431_v54 = vld [vmem:[%s1553_s2 + $0x18] sm:$0xff] }
  0x45   : > { %948 = vmatprep.subr.bf16.mxu0 %v947_v20  ;;  %986 = vmatprep.subr.bf16.mxu1 %v947_v20  ;;  %v967_v52 = vpack.c.bf16 %v429_v50, %v428_v49  ;;  %v219_v55 = vld [vmem:[%s1286_s22] sm:$0xff]  ;;  %v222_v57 = vld [vmem:[%s1286_s22 + $0x18] sm:$0xff]  ;;  %v971_v59 = vpack.c.bf16 %v431_v54, %v430_v53  ;;  %v221_v60 = vld [vmem:[%s1286_s22 + $0x10] sm:$0xff] }
  0x46   : > { %v243_v56 = vld [vmem:[%s1286_s22 + $0xc0] sm:$0xff]  ;;  %v246_v58 = vld [vmem:[%s1286_s22 + $0xd8] sm:$0xff]  ;;  %v245_v61 = vld [vmem:[%s1286_s22 + $0xd0] sm:$0xff] }
  0x47   : > { %v224_v62 = vld [vmem:[%s1286_s22 + $0x28] sm:$0xff]  ;;  %v223_v0 = vld [vmem:[%s1286_s22 + $0x20] sm:$0xff]  ;;  %v226_v2 = vld [vmem:[%s1286_s22 + $0x38] sm:$0xff] }
  0x48   : > { %950 = vmatpush3.bf16.msra.mxu0 %v949_v26  ;;  %994 = vmatpush3.bf16.msra.mxu1 %v949_v26  ;;  %v248_v63 = vld [vmem:[%s1286_s22 + $0xe8] sm:$0xff]  ;;  %v247_v1 = vld [vmem:[%s1286_s22 + $0xe0] sm:$0xff]  ;;  %v250_v3 = vld [vmem:[%s1286_s22 + $0xf8] sm:$0xff] }
  0x49   : > { %952 = vmatprep.subr.bf16.mxu0 %v951_v27  ;;  %987 = vmatprep.subr.bf16.mxu1 %v951_v27  ;;  %v225_v4 = vld [vmem:[%s1286_s22 + $0x30] sm:$0xff]  ;;  %v228_v6 = vld [vmem:[%s1286_s22 + $0x48] sm:$0xff]  ;;  %v227_v7 = vld [vmem:[%s1286_s22 + $0x40] sm:$0xff] }
  0x4a   : > { %v249_v5 = vld [vmem:[%s1286_s22 + $0xf0] sm:$0xff]  ;;  %v230_v8 = vld [vmem:[%s1286_s22 + $0x58] sm:$0xff]  ;;  %v232_v10 = vld [vmem:[%s1286_s22 + $0x68] sm:$0xff] }
  0x4b   : > { %v229_v9 = vld [vmem:[%s1286_s22 + $0x50] sm:$0xff]  ;;  %v231_v11 = vld [vmem:[%s1286_s22 + $0x60] sm:$0xff]  ;;  %v234_v12 = vld [vmem:[%s1286_s22 + $0x78] sm:$0xff] }
  0x4c   : > { %954 = vmatpush3.bf16.msra.mxu0 %v953_v32  ;;  %995 = vmatpush3.bf16.msra.mxu1 %v953_v32  ;;  %v233_v13 = vld [vmem:[%s1286_s22 + $0x70] sm:$0xff]  ;;  %v236_v14 = vld [vmem:[%s1286_s22 + $0x88] sm:$0xff]  ;;  %v235_v15 = vld [vmem:[%s1286_s22 + $0x80] sm:$0xff] }
  0x4d   : > { %956 = vmatprep.subr.bf16.mxu0 %v955_v33  ;;  %988 = vmatprep.subr.bf16.mxu1 %v955_v33  ;;  %v238_v16 = vld [vmem:[%s1286_s22 + $0x98] sm:$0xff]  ;;  %v237_v17 = vld [vmem:[%s1286_s22 + $0x90] sm:$0xff]  ;;  %v240_v18 = vld [vmem:[%s1286_s22 + $0xa8] sm:$0xff] }
  0x4e   : > { %v239_v19 = vld [vmem:[%s1286_s22 + $0xa0] sm:$0xff]  ;;  %v242_v20 = vld [vmem:[%s1286_s22 + $0xb8] sm:$0xff]  ;;  %v241_v21 = vld [vmem:[%s1286_s22 + $0xb0] sm:$0xff] }
  0x4f   : > { %v432_v22 = vld [vmem:[%s1553_s2 + $0x20] sm:$0xff]  ;;  %v433_v23 = vld [vmem:[%s1553_s2 + $0x28] sm:$0xff]  ;;  %v434_v25 = vld [vmem:[%s1553_s2 + $0x30] sm:$0xff] }
  0x50   : > { %958 = vmatpush3.bf16.msra.mxu0 %v957_v39  ;;  %996 = vmatpush3.bf16.msra.mxu1 %v957_v39  ;;  %v975_v24 = vpack.c.bf16 %v433_v23, %v432_v22  ;;  %v435_v26 = vld [vmem:[%s1553_s2 + $0x38] sm:$0xff] }
  0x51   : > { %960 = vmatprep.subr.bf16.mxu0 %v959_v40  ;;  %989 = vmatprep.subr.bf16.mxu1 %v959_v40  ;;  %v979_v27 = vpack.c.bf16 %v435_v26, %v434_v25 }
  0x54   : > { %962 = vmatpush3.bf16.msra.mxu0 %v961_v45  ;;  %997 = vmatpush3.bf16.msra.mxu1 %v961_v45 }
  0x55   : > { %964 = vmatprep.subr.bf16.mxu0 %v963_v46  ;;  %990 = vmatprep.subr.bf16.mxu1 %v963_v46 }
  0x58   : > { %966 = vmatpush3.bf16.msra.mxu0 %v965_v51  ;;  %998 = vmatpush3.bf16.msra.mxu1 %v965_v51 }
  0x59   : > { %968 = vmatprep.subr.bf16.mxu1 %v967_v52 }
  0x5b   : > { %348 = vmatmul.mubr.f32.vlgmr.msra.gmra.mrb[0].mxu0 %v219_v55  ;;  %408 = vmatmul.mubr.f32.vlgmr.msra.gmra.mrb[0].mxu1 %v243_v56 }
  0x5c   : > { %352 = vmatprep.mubr.f32.mxu0 %v222_v57  ;;  %412 = vmatprep.mubr.f32.mxu1 %v246_v58 }
  0x5d   : > { %970 = vmatpush3.bf16.msra.mxu1 %v967_v52 }
  0x5e   : > { %972 = vmatprep.subr.bf16.mxu1 %v971_v59 }
  0x5f   : > { %353 = vmatmul.mubr.f32.gmra.mrb[2].mxu0 %v221_v60  ;;  %413 = vmatmul.mubr.f32.gmra.mrb[2].mxu1 %v245_v61 }
  0x60   : > { %357 = vmatprep.mubr.f32.mxu0 %v224_v62  ;;  %417 = vmatprep.mubr.f32.mxu1 %v248_v63 }
  0x61   : > { %974 = vmatpush3.bf16.msra.mxu1 %v971_v59 }
  0x62   : > { %976 = vmatprep.subr.bf16.mxu1 %v975_v24 }
  0x63   : > { %358 = vmatmul.mubr.f32.gmra.mrb[4].mxu0 %v223_v0  ;;  %418 = vmatmul.mubr.f32.gmra.mrb[4].mxu1 %v247_v1 }
  0x64   : > { %362 = vmatprep.mubr.f32.mxu0 %v226_v2  ;;  %422 = vmatprep.mubr.f32.mxu1 %v250_v3 }
  0x65   : > { %978 = vmatpush3.bf16.msra.mxu1 %v975_v24 }
  0x66   : > { %980 = vmatprep.subr.bf16.mxu1 %v979_v27 }
  0x67   : > { %363 = vmatmul.mubr.f32.gmra.mrb[6].mxu0 %v225_v4  ;;  %423 = vmatmul.mubr.f32.gmra.mrb[6].mxu1 %v249_v5 }
  0x68   : > { %367 = vmatprep.mubr.f32.mxu0 %v228_v6 }
  0x69   : > { %982 = vmatpush3.bf16.msra.mxu1 %v979_v27 }
  0x6b   : > { %368 = vmatmul.mubr.f32.gmra.mrb[8].mxu0 %v227_v7 }
  0x6c   : > { %372 = vmatprep.mubr.f32.mxu0 %v230_v8 }
  0x6f   : > { %373 = vmatmul.mubr.f32.gmra.mrb[10].mxu0 %v229_v9 }
  0x70   : > { %377 = vmatprep.mubr.f32.mxu0 %v232_v10 }
  0x73   : > { %378 = vmatmul.mubr.f32.gmra.mrb[12].mxu0 %v231_v11 }
  0x74   : > { %382 = vmatprep.mubr.f32.mxu0 %v234_v12  ;;  %v1463_v12 = vld [vmem:[%s1554_s3] ss:$0 sm:$0xff] }
  0x77   : > { %383 = vmatmul.mubr.f32.gmra.mrb[14].mxu0 %v233_v13 }
  0x78   : > { %387 = vmatprep.mubr.f32.mxu0 %v236_v14 }
  0x7b   : > { %388 = vmatmul.mubr.f32.gmra.mrb[16].mxu0 %v235_v15 }
  0x7c   : > { %392 = vmatprep.mubr.f32.mxu0 %v238_v16 }
  0x7f   : > { %393 = vmatmul.mubr.f32.gmra.mrb[18].mxu0 %v237_v17 }
  0x80   : > { %397 = vmatprep.mubr.f32.mxu0 %v240_v18 }
  0x83   : > { %398 = vmatmul.mubr.f32.gmra.mrb[20].mxu0 %v239_v19 }
  0x84   : > { %402 = vmatprep.mubr.f32.mxu0 %v242_v20 }
  0x87   : > { %403 = vmatmul.mubr.f32.gmra.mrb[22].mxu0 %v241_v21 }
 0x12e   : > { %v823_v28 = vpop.f32.mrb[0].mxu0  ;;  %v859_v29 = vpop.f32.mrb[0].mxu1 }
 0x12f   : > { %v824_v30 = vpop.f32.mrb[1].mxu0  ;;  %v860_v31 = vpop.f32.mrb[1].mxu1 }
 0x130   : > { %v825_v32 = vadd.f32 %v824_v30, %v823_v28  ;;  %v861_v33 = vadd.f32 %v860_v31, %v859_v29 }
 0x132   : > { %v826_v34 = vpop.f32.mrb[2].mxu0  ;;  %911 = vmatprep.mubr.msk.f32.mxu1 %vm443_vm0, %v825_v32  ;;  %v862_v35 = vpop.f32.mrb[2].mxu1 }
 0x133   : > { %v827_v36 = vpop.f32.mrb[3].mxu0  ;;  %v863_v37 = vpop.f32.mrb[3].mxu1 }
 0x134   : > { %v828_v38 = vadd.f32 %v827_v36, %v826_v34  ;;  %v864_v39 = vadd.f32 %v863_v37, %v862_v35 }
 0x136   : > { %v829_v40 = vpop.f32.mrb[4].mxu0  ;;  %912 = vmatmul.mubr.msk.f32.vlgmr.msra.gmra.mrb[8].mxu1 %vm443_vm0, %v828_v38  ;;  %v865_v41 = vpop.f32.mrb[4].mxu1 }
 0x137   : > { %v830_v42 = vpop.f32.mrb[5].mxu0  ;;  %v866_v43 = vpop.f32.mrb[5].mxu1 }
 0x138   : > { %v831_v44 = vadd.f32 %v830_v42, %v829_v40  ;;  %v867_v45 = vadd.f32 %v866_v43, %v865_v41 }
 0x13a   : > { %v832_v46 = vpop.f32.mrb[6].mxu0  ;;  %914 = vmatprep.mubr.msk.f32.mxu1 %vm443_vm0, %v831_v44  ;;  %v868_v47 = vpop.f32.mrb[6].mxu1 }
 0x13b   : > { %v833_v48 = vpop.f32.mrb[7].mxu0  ;;  %v869_v49 = vpop.f32.mrb[7].mxu1 }
 0x13c   : > { %v834_v50 = vadd.f32 %v833_v48, %v832_v46  ;;  %v870_v51 = vadd.f32 %v869_v49, %v868_v47 }
 0x13e   : > { %v835_v52 = vpop.f32.mrb[8].mxu0  ;;  %915 = vmatmul.mubr.msk.f32.gmra.mrb[10].mxu1 %vm443_vm0, %v834_v50 }
 0x13f   : > { %v836_v53 = vpop.f32.mrb[9].mxu0 }
 0x140   : > { %v837_v54 = vadd.f32 %v836_v53, %v835_v52 }
 0x142   : > { %v838_v55 = vpop.f32.mrb[10].mxu0  ;;  %917 = vmatprep.mubr.msk.f32.mxu1 %vm443_vm0, %v837_v54 }
 0x143   : > { %v839_v56 = vpop.f32.mrb[11].mxu0 }
 0x144   : > { %v840_v57 = vadd.f32 %v839_v56, %v838_v55 }
 0x146   : > { %v841_v58 = vpop.f32.mrb[12].mxu0  ;;  %918 = vmatmul.mubr.msk.f32.gmra.mrb[12].mxu1 %vm443_vm0, %v840_v57 }
 0x147   : > { %v842_v59 = vpop.f32.mrb[13].mxu0 }
 0x148   : > { %v843_v60 = vadd.f32 %v842_v59, %v841_v58 }
 0x14a   : > { %v844_v61 = vpop.f32.mrb[14].mxu0  ;;  %920 = vmatprep.mubr.msk.f32.mxu1 %vm443_vm0, %v843_v60 }
 0x14b   : > { %v845_v62 = vpop.f32.mrb[15].mxu0 }
 0x14c   : > { %v846_v63 = vadd.f32 %v845_v62, %v844_v61 }
 0x14e   : > { %v847_v0 = vpop.f32.mrb[16].mxu0  ;;  %921 = vmatmul.mubr.msk.f32.gmra.mrb[14].mxu1 %vm443_vm0, %v846_v63 }
 0x14f   : > { %v848_v1 = vpop.f32.mrb[17].mxu0 }
 0x150   : > { %v849_v2 = vadd.f32 %v848_v1, %v847_v0 }
 0x152   : > { %v850_v3 = vpop.f32.mrb[18].mxu0  ;;  %923 = vmatprep.mubr.msk.f32.mxu1 %vm443_vm0, %v849_v2 }
 0x153   : > { %v851_v4 = vpop.f32.mrb[19].mxu0 }
 0x154   : > { %v852_v5 = vadd.f32 %v851_v4, %v850_v3 }
 0x156   : > { %v853_v6 = vpop.f32.mrb[20].mxu0  ;;  %924 = vmatmul.mubr.msk.f32.gmra.mrb[16].mxu1 %vm443_vm0, %v852_v5 }
 0x157   : > { %v854_v7 = vpop.f32.mrb[21].mxu0 }
 0x158   : > { %v855_v8 = vadd.f32 %v854_v7, %v853_v6 }
 0x15a   : > { %v856_v9 = vpop.f32.mrb[22].mxu0  ;;  %926 = vmatprep.mubr.msk.f32.mxu1 %vm443_vm0, %v855_v8 }
 0x15b   : > { %v857_v10 = vpop.f32.mrb[23].mxu0 }
 0x15c   : > { %v858_v11 = vadd.f32 %v857_v10, %v856_v9 }
 0x15e   : > { %927 = vmatmul.mubr.msk.f32.gmra.mrb[18].mxu1 %vm443_vm0, %v858_v11 }
 0x15f   : > { %929 = vmatprep.mubr.msk.f32.mxu1 %vm443_vm0, %v861_v33 }
 0x162   : > { %930 = vmatmul.mubr.msk.f32.gmra.mrb[20].mxu1 %vm443_vm0, %v864_v39 }
 0x163   : > { %932 = vmatprep.mubr.msk.f32.mxu1 %vm443_vm0, %v867_v45 }
 0x166   : > { %933 = vmatmul.mubr.msk.f32.gmra.mrb[22].mxu1 %vm443_vm0, %v870_v51 }
 0x209   : > { %v913_v13 = vpop.f32.mrb[8].mxu1 }
 0x20a   : > { %v564_v14 = vadd.f32 %v913_v13, %v1463_v12  ;;  %v558_v15 = vpop.f32.mrb[9].mxu1 }
 0x20b   : > { %v559_v16 = vadd.f32 %v1463_v12, %v558_v15 }
 0x20c   : > { %v638_v17 = vmax.f32 %v564_v14, 0.0 }
 0x20d   : > { %v637_v18 = vmax.f32 %v559_v16, 0.0 }
 0x20e   : > { %654 = vst [vmem:[%s1468_s30 + $0x8] sm:$0xff] %v638_v17 }
 0x20f   : > { %653 = vst [vmem:[%s1468_s30] sm:$0xff] %v637_v18 }
 0x211   : > { %v916_v19 = vpop.f32.mrb[10].mxu1 }
 0x212   : > { %v574_v20 = vadd.f32 %v916_v19, %v1463_v12  ;;  %v568_v21 = vpop.f32.mrb[11].mxu1 }
 0x213   : > { %v569_v22 = vadd.f32 %v1463_v12, %v568_v21 }
 0x214   : > { %v640_v23 = vmax.f32 %v574_v20, 0.0 }
 0x215   : > { %v639_v24 = vmax.f32 %v569_v22, 0.0 }
 0x216   : > { %656 = vst [vmem:[%s1468_s30 + $0x18] sm:$0xff] %v640_v23 }
 0x217   : > { %655 = vst [vmem:[%s1468_s30 + $0x10] sm:$0xff] %v639_v24 }
 0x219   : > { %v919_v25 = vpop.f32.mrb[12].mxu1 }
 0x21a   : > { %v584_v26 = vadd.f32 %v919_v25, %v1463_v12  ;;  %v578_v27 = vpop.f32.mrb[13].mxu1 }
 0x21b   : > { %v579_v28 = vadd.f32 %v1463_v12, %v578_v27 }
 0x21c   : > { %v642_v29 = vmax.f32 %v584_v26, 0.0 }
 0x21d   : > { %v641_v30 = vmax.f32 %v579_v28, 0.0 }
 0x21e   : > { %658 = vst [vmem:[%s1468_s30 + $0x28] sm:$0xff] %v642_v29 }
 0x21f   : > { %657 = vst [vmem:[%s1468_s30 + $0x20] sm:$0xff] %v641_v30 }
 0x221   : > { %v922_v31 = vpop.f32.mrb[14].mxu1 }
 0x222   : > { %v594_v32 = vadd.f32 %v922_v31, %v1463_v12  ;;  %v588_v33 = vpop.f32.mrb[15].mxu1 }
 0x223   : > { %v589_v34 = vadd.f32 %v1463_v12, %v588_v33 }
 0x224   : > { %v644_v35 = vmax.f32 %v594_v32, 0.0 }
 0x225   : > { %v643_v36 = vmax.f32 %v589_v34, 0.0 }
 0x226   : > { %660 = vst [vmem:[%s1468_s30 + $0x38] sm:$0xff] %v644_v35 }
 0x227   : > { %659 = vst [vmem:[%s1468_s30 + $0x30] sm:$0xff] %v643_v36 }
 0x229   : > { %v925_v37 = vpop.f32.mrb[16].mxu1 }
 0x22a   : > { %v604_v38 = vadd.f32 %v925_v37, %v1463_v12  ;;  %v598_v39 = vpop.f32.mrb[17].mxu1 }
 0x22b   : > { %v599_v40 = vadd.f32 %v1463_v12, %v598_v39 }
 0x22c   : > { %v646_v41 = vmax.f32 %v604_v38, 0.0 }
 0x22d   : > { %v645_v42 = vmax.f32 %v599_v40, 0.0 }
 0x22e   : > { %662 = vst [vmem:[%s1468_s30 + $0x48] sm:$0xff] %v646_v41 }
 0x22f   : > { %661 = vst [vmem:[%s1468_s30 + $0x40] sm:$0xff] %v645_v42 }
 0x231   : > { %v928_v43 = vpop.f32.mrb[18].mxu1 }
 0x232   : > { %v614_v44 = vadd.f32 %v928_v43, %v1463_v12  ;;  %v608_v45 = vpop.f32.mrb[19].mxu1 }
 0x233   : > { %v609_v46 = vadd.f32 %v1463_v12, %v608_v45 }
 0x234   : > { %v648_v47 = vmax.f32 %v614_v44, 0.0 }
 0x235   : > { %v647_v48 = vmax.f32 %v609_v46, 0.0  ;;  %v931_v49 = vpop.f32.mrb[20].mxu1 }
 0x236   : > { %664 = vst [vmem:[%s1468_s30 + $0x58] sm:$0xff] %v648_v47  ;;  %v624_v50 = vadd.f32 %v931_v49, %v1463_v12  ;;  %v618_v51 = vpop.f32.mrb[21].mxu1 }
 0x237   : > { %663 = vst [vmem:[%s1468_s30 + $0x50] sm:$0xff] %v647_v48  ;;  %v619_v52 = vadd.f32 %v1463_v12, %v618_v51 }
 0x238   : > { %v650_v53 = vmax.f32 %v624_v50, 0.0 }
 0x239   : > { %v649_v54 = vmax.f32 %v619_v52, 0.0  ;;  %v934_v55 = vpop.f32.mrb[22].mxu1 }
 0x23a   : > { %666 = vst [vmem:[%s1468_s30 + $0x68] sm:$0xff] %v650_v53  ;;  %v634_v56 = vadd.f32 %v934_v55, %v1463_v12  ;;  %v628_v57 = vpop.f32.mrb[23].mxu1 }
 0x23b   : > { %665 = vst [vmem:[%s1468_s30 + $0x60] sm:$0xff] %v649_v54  ;;  %v629_v58 = vadd.f32 %v1463_v12, %v628_v57 }
 0x23c   : > { %v652_v59 = vmax.f32 %v634_v56, 0.0 }
 0x23d   : > { %v651_v60 = vmax.f32 %v629_v58, 0.0 }
 0x23e   : > { %668 = vst [vmem:[%s1468_s30 + $0x78] sm:$0xff] %v652_v59 }
 0x23f   : > { %667 = vst [vmem:[%s1468_s30 + $0x70] sm:$0xff] %v651_v60 }
 0x240   : > { %1092 = shalt.err (!%p1089_p2)
}
 0x241   : > { %s1093_s11 = scalar_lea.hbm %s1503_s9, 2048  ;;  %s1097_s22 = scalar_lea.hbm %s1555_s4, 4096 }
 0x242   : > { %p1094_p4 = scmp.ne.s32.totalorder %s1503_s9, %s1093_s11  ;;  %p1098_p9 = scmp.lt.u32.totalorder %s1503_s9, %s1555_s4 }
 0x243   : > { %p1099_p1 = scmp.lt.u32.totalorder %s1097_s22, %s1093_s11  ;;  %p1101_p6 = scmp.lt.u32.totalorder %s1093_s11, %s1503_s9 }
 0x244   : > { %p1095_p5 = pnand %p1094_p4, %p1562_p11 }
 0x245   : > { %p1100_p3 = por %p1099_p1, %p1098_p9 }
 0x246   : > { %p1096_p7 = pneg %p1095_p5 }
 0x247   : > { %p1102_p12 = por %p1101_p6, %p1100_p3 }
 0x249   : > { %p1103_p13 = pnand %p1102_p12, %p1096_p7 }
 0x24b   : > { %1106 = shalt.err (!%p1103_p13)
}
 0x24c   : > { %s1151_s30 = smov 128   ;;  %s1152_s5 = smov 8  }
 0x24d   : > { %1001 = dma.vmem_to_hbm [thread:$0]  (%p1562_p11), %s1505_s26, 2048, %s1503_s9, %s670_s19, %s1151_s30, %s1151_s30, %s1152_s5  }
 0x24e PF: > { %s698_s6 = sand.u32 1, %s1133_s15   ;;  %p1563_p8 = scmp.ne.s32.totalorder %s1560_s28, 0 }
 0x24f   : > { %p1564_p10 = scmp.ge.s32.totalorder %s1145_s18, 2  ;;  %s699_s7 = scalar_lea.sflag [#allocation4], %s698_s6 }
 0x251   : > { %p1008_p0 = pnand %p1564_p10, %p1563_p8 }
 0x253   : > { %1128 = dma.done.wait (!%p1008_p0), %s699_s7, 2048  }
 0x254   : > { %1130 = vsyncadd (!%p1008_p0), %s699_s7, 4294965248  ;;  %p17_p2 = scmp.ge.s32.totalorder %s1203_s21, 4   ;;  %s1565_s15 = smov %s1137_s16 }
 0x255   : > { %s1566_s16 = smov %s1141_s17  ;;  %s1567_s17 = smov %s1215_s24 }
 0x256   : > { %s1568_s18 = smov %s1203_s21  ;;  %19 = sbr.rel (!%p17_p2) target bundleno = 5 (0x5), region = 81 }
 0x25d   :  { %704 = vsyncpa [#allocation3], 1 }
 0x25e   :  { %706 = vsyncpa [#allocation3 + $0x1], 1 }
 0x25f   :  { %707 = vsyncpa [#allocation4], 1 }
 0x260   :  { %709 = vsyncpa [#allocation4 + $0x1], 1 }

</bundles_post_ra>
